<compile_context>
chip_gen: v7x
topology: tpu7x:2x2x1
jax: 0.10.0
libtpu: 0.0.40
codegen_flags: <defaults>
</compile_context>

<pallas_src>
import math
import functools

import jax
import jax.numpy as jnp
from jax.experimental import pallas as pl
from jax.experimental.pallas import tpu as pltpu

_VMEM_LIMIT = 64 * 1024 * 1024


# ---------------------------------------------------------------------------
# Tile helpers
# ---------------------------------------------------------------------------
def _pick_tile(dim, preferred, align):
    """Largest tile <= preferred that divides dim and is a multiple of align,
    falling back to the full dim (a block equal to the full array dim is legal)."""
    if dim <= preferred:
        return dim
    t = (preferred // align) * align
    while t >= align:
        if dim % t == 0:
            return t
        t -= align
    return dim


def _heads_per_block(h, d_k):
    """Heads per D-block so the block lane width is a multiple of 128 (or == D)."""
    if d_k % 128 == 0:
        return 1
    step = 128 // math.gcd(128, d_k)  # minimal head count with (hb*d_k) % 128 == 0
    hb = step
    while hb < h:
        if h % hb == 0:
            return hb
        hb += step
    return h  # full-D block (always a legal block shape)


# ---------------------------------------------------------------------------
# Tiled linear projection kernel: y = x @ W^T + b  (W kept in (Dout, Din) layout)
# ---------------------------------------------------------------------------
def _linear_kernel(x_ref, w_ref, b_ref, o_ref, acc_ref):
    @pl.when(pl.program_id(2) == 0)
    def _():
        acc_ref[...] = jnp.zeros_like(acc_ref)

    # x_tile @ w_tile^T contracted natively (no transpose op, no host-side w.T).
    acc_ref[...] += jax.lax.dot_general(
        x_ref[...], w_ref[...], (((1,), (1,)), ((), ())),
        preferred_element_type=jnp.float32,
    )

    @pl.when(pl.program_id(2) == pl.num_programs(2) - 1)
    def _():
        o_ref[...] = (acc_ref[...] + b_ref[...].astype(jnp.float32)).astype(o_ref.dtype)


def linear(x, w, b, *, out_dtype=None):
    """x: (M, Din), w: (Dout, Din) [PyTorch nn.Linear layout], b: (Dout,).

    Operands are used at their incoming dtype (caller casts to bf16 for the MXU
    fast path); accumulation is always f32.
    """
    M, K = x.shape
    N = w.shape[0]
    out_dtype = out_dtype or x.dtype
    tm = _pick_tile(M, 512, 8)
    tn = _pick_tile(N, 512, 128)
    tk = _pick_tile(K, 1024, 128)
    grid = (M // tm, N // tn, K // tk)
    return pl.pallas_call(
        _linear_kernel,
        out_shape=jax.ShapeDtypeStruct((M, N), out_dtype),
        grid=grid,
        in_specs=[
            pl.BlockSpec((tm, tk), lambda i, j, k: (i, k)),
            pl.BlockSpec((tn, tk), lambda i, j, k: (j, k)),
            pl.BlockSpec((1, tn), lambda i, j, k: (0, j)),
        ],
        out_specs=pl.BlockSpec((tm, tn), lambda i, j, k: (i, j)),
        scratch_shapes=[pltpu.VMEM((tm, tn), jnp.float32)],
        compiler_params=pltpu.CompilerParams(
            dimension_semantics=("parallel", "parallel", "arbitrary"),
            vmem_limit_bytes=_VMEM_LIMIT,
        ),
    )(x, w, b.reshape(1, N))


# ---------------------------------------------------------------------------
# Flash (online-softmax) RoPE attention kernel.
# Grid: (batch, head-block, q-tile, kv-tile); q/k/v/o blocks are lane-dense
# (tq|tk, hb*d_k) slabs of the (B, S, D) arrays.  Q/K features arrive already
# permuted per head to [even | odd] order with 1/sqrt(d_k) folded into Wq.
# ---------------------------------------------------------------------------
def _flash_mha_kernel(q_ref, k_ref, v_ref, rq_ref, rk_ref, o_ref,
                      m_scr, l_scr, acc_scr, *, hb, d_k, mxu_dtype):
    dk2 = d_k // 2
    kv_i = pl.program_id(3)

    @pl.when(kv_i == 0)
    def _():
        m_scr[...] = jnp.full_like(m_scr, -jnp.inf)
        l_scr[...] = jnp.zeros_like(l_scr)
        acc_scr[...] = jnp.zeros_like(acc_scr)

    # Packed rope tables: [cos | sin] halves, rows = q / kv positions of this tile.
    cq, sq = rq_ref[:, :dk2], rq_ref[:, dk2:]
    ck, sk = rk_ref[:, :dk2], rk_ref[:, dk2:]
    dn = (((1,), (1,)), ((), ()))  # contract last dims: A @ B^T without a transpose op

    for g in range(hb):  # small, bounded unroll (heads within this 128-lane block)
        sl = slice(g * d_k, (g + 1) * d_k)
        qg = q_ref[:, sl]
        kg = k_ref[:, sl]
        q1, q2 = qg[:, :dk2], qg[:, dk2:]
        k1, k2 = kg[:, :dk2], kg[:, dk2:]
        # Split-half RoPE (f32 math via promotion); fused full-d_k score matmul.
        qr = jnp.concatenate([q1 * cq - q2 * sq, q2 * cq + q1 * sq], axis=-1)
        kr = jnp.concatenate([k1 * ck - k2 * sk, k2 * ck + k1 * sk], axis=-1)
        if mxu_dtype is not None:
            qr = qr.astype(mxu_dtype)
            kr = kr.astype(mxu_dtype)
        a = jax.lax.dot_general(qr, kr, dn, preferred_element_type=jnp.float32)

        # Online-softmax statistics (f32).
        m_prev = m_scr[:, g:g + 1]
        l_prev = l_scr[:, g:g + 1]
        m_new = jnp.maximum(m_prev, jnp.max(a, axis=-1, keepdims=True))
        alpha = jnp.exp(m_prev - m_new)
        p = jnp.exp(a - m_new)
        l_scr[:, g:g + 1] = alpha * l_prev + jnp.sum(p, axis=-1, keepdims=True)

        vg = v_ref[:, sl]
        if mxu_dtype is not None:
            p = p.astype(mxu_dtype)
            vg = vg.astype(mxu_dtype)
        acc_scr[:, sl] = alpha * acc_scr[:, sl] + jnp.dot(
            p, vg, preferred_element_type=jnp.float32)
        m_scr[:, g:g + 1] = m_new

    @pl.when(kv_i == pl.num_programs(3) - 1)
    def _():
        outs = []
        for g in range(hb):
            sl = slice(g * d_k, (g + 1) * d_k)
            outs.append(acc_scr[:, sl] / l_scr[:, g:g + 1])  # exact normalize
        # Single lane-dense store of the whole (tq, hb*d_k) output slab.
        o_ref[...] = jnp.concatenate(outs, axis=-1).astype(o_ref.dtype)


def _attention(q, k, v, rope, h, *, mxu_dtype, out_dtype):
    B, S, D = q.shape
    d_k = D // h
    hb = _heads_per_block(h, d_k)
    n_hb = h // hb
    wb = hb * d_k
    tq = _pick_tile(S, 256, 8)
    tk = _pick_tile(S, 512, 8)
    grid = (B, n_hb, S // tq, S // tk)

    kernel = functools.partial(_flash_mha_kernel, hb=hb, d_k=d_k, mxu_dtype=mxu_dtype)
    return pl.pallas_call(
        kernel,
        out_shape=jax.ShapeDtypeStruct((B, S, D), out_dtype),
        grid=grid,
        in_specs=[
            pl.BlockSpec((None, tq, wb), lambda b, g, qi, ki: (b, qi, g)),
            pl.BlockSpec((None, tk, wb), lambda b, g, qi, ki: (b, ki, g)),
            pl.BlockSpec((None, tk, wb), lambda b, g, qi, ki: (b, ki, g)),
            pl.BlockSpec((tq, d_k), lambda b, g, qi, ki: (qi, 0)),   # rope rows for q tile
            pl.BlockSpec((tk, d_k), lambda b, g, qi, ki: (ki, 0)),   # rope rows for kv tile
        ],
        out_specs=pl.BlockSpec((None, tq, wb), lambda b, g, qi, ki: (b, qi, g)),
        scratch_shapes=[
            pltpu.VMEM((tq, hb), jnp.float32),   # running max m
            pltpu.VMEM((tq, hb), jnp.float32),   # running sum l
            pltpu.VMEM((tq, wb), jnp.float32),   # output accumulator
        ],
        compiler_params=pltpu.CompilerParams(
            dimension_semantics=("parallel", "parallel", "parallel", "arbitrary"),
            vmem_limit_bytes=_VMEM_LIMIT,
        ),
    )(q, k, v, rope, rope)


# ---------------------------------------------------------------------------
# One-time parameter preparation (parameter-load time, NOT per forward call):
#  - permute Wq/Wk rows (+ bq/bk) per head to [even | odd] feature order so the
#    interleaved-pair rotation becomes split-half RoPE (attention scores are
#    invariant since q and k are permuted identically);
#  - fold 1/sqrt(d_k) into Wq/bq (rope is linear, so scaling commutes).
# ---------------------------------------------------------------------------
def prepare_params(Ws, bs, h):
    Wq, Wk, Wv, Wo = Ws
    bq, bk, bv, bo = bs
    D = Wq.shape[0]
    d_k = D // h
    f = jnp.arange(d_k)
    perm_head = jnp.concatenate([f[0::2], f[1::2]])
    perm = (jnp.arange(h)[:, None] * d_k + perm_head[None, :]).reshape(-1)
    scale = d_k ** -0.5
    Ws_p = (Wq[perm] * scale, Wk[perm], Wv, Wo)
    bs_p = (bq[perm] * scale, bk[perm], bv, bo)
    return Ws_p, bs_p


def multi_headed_attention(query, keys, values, params, h, theta=1000.0, *,
                           mxu_dtype=jnp.bfloat16):
    """Forward of MultiHeadedAttention (eval mode, mask=None).

    params: output of prepare_params().  mxu_dtype=bfloat16 (default) runs the
    MXU in bf16 with f32 accumulation and bf16 intermediates; mxu_dtype=None is
    the exact f32 path.
    """
    Wq, Wk, Wv, Wo = params[0]
    bq, bk, bv, bo = params[1]
    B, S, D = query.shape
    d_k = D // h
    dk2 = d_k // 2
    final_dtype = query.dtype

    cdt = mxu_dtype if mxu_dtype is not None else query.dtype
    cast = lambda z: z if z.dtype == cdt else z.astype(cdt)

    # Projections: operands cast before the call (halves HBM traffic on the bf16
    # path); outputs emitted directly in the compute dtype.  (B*S, D) <-> (B, S, D)
    # reshapes only split/merge the major dim -> no relayout.
    q = linear(cast(query).reshape(B * S, D), cast(Wq), bq, out_dtype=cdt).reshape(B, S, D)
    k = linear(cast(keys).reshape(B * S, D), cast(Wk), bk, out_dtype=cdt).reshape(B, S, D)
    v = linear(cast(values).reshape(B * S, D), cast(Wv), bv, out_dtype=cdt).reshape(B, S, D)

    # Packed split-half RoPE table: columns [0:dk2] = cos, [dk2:d_k] = sin,
    # column p <-> frequency theta^(-2 p / d_k) (== floor(j/2) of the reference).
    pos = jnp.arange(S, dtype=jnp.float32)[:, None]
    inv_freq = jnp.exp(
        -(2.0 * jnp.log(jnp.float32(theta)) / d_k) * jnp.arange(dk2, dtype=jnp.float32)
    )[None, :]
    ang = pos * inv_freq
    rope = jnp.concatenate([jnp.cos(ang), jnp.sin(ang)], axis=-1)  # (S, d_k) f32

    y = _attention(q, k, v, rope, h, mxu_dtype=mxu_dtype, out_dtype=cdt)

    out = linear(y.reshape(B * S, D), cast(Wo), bo, out_dtype=final_dtype)
    return out.reshape(B, S, D)


# ---------------------------------------------------------------------------
# Pure-JAX reference (mirrors the PyTorch forward) for correctness checking
# ---------------------------------------------------------------------------
def reference(query, keys, values, Ws, bs, h, theta=1000.0):
    B, S, D = query.shape
    d_k = D // h

    def lin(x, W, b):
        return x @ W.T + b

    def split(x):
        return x.reshape(B, S, h, d_k).transpose(0, 2, 1, 3)

    q = split(lin(query, Ws[0], bs[0]))
    k = split(lin(keys, Ws[1], bs[1]))
    v = split(lin(values, Ws[2], bs[2]))

    m = jnp.arange(S, dtype=jnp.float32).reshape(S, 1)
    t = jnp.arange(d_k, dtype=jnp.float32).reshape(1, d_k)
    t = jnp.exp(-(2.0 * jnp.log(jnp.float32(theta)) / d_k) * jnp.floor(t / 2.0))
    r1 = jnp.cos(m * t)
    r2 = jnp.sin(m * t)
    L = jnp.kron(
        jnp.eye(d_k // 2, dtype=jnp.float32),
        jnp.array([[0.0, -1.0], [1.0, 0.0]], dtype=jnp.float32),
    )

    def rope(x):
        return x * r1 + jnp.einsum("bhsl,ml->bhsm", x, L) * r2

    qr, kr = rope(q), rope(k)
    A = jnp.einsum("bhqd,bhkd->bhqk", qr, kr) * (d_k ** -0.5)
    O = jax.nn.softmax(A, axis=-1)
    y = jnp.einsum("bhqk,bhkd->bhqd", O, v)
    y = y.transpose(0, 2, 1, 3).reshape(B, S, D)
    return lin(y, Ws[3], bs[3])


if __name__ == "__main__":
    B, S, h, d_model = 2, 8, 4, 32
    theta = 1000.0

    key = jax.random.PRNGKey(0)
    k1, k2, k3, kp = jax.random.split(key, 4)
    query = jax.random.normal(k1, (B, S, d_model), jnp.float32)
    keys_ = jax.random.normal(k2, (B, S, d_model), jnp.float32)
    values = jax.random.normal(k3, (B, S, d_model), jnp.float32)

    # Deterministic nn.Linear-style init (uniform +-1/sqrt(d_model)) for the 4 projections.
    wkeys = jax.random.split(kp, 8)
    bound = 1.0 / math.sqrt(d_model)
    Ws = [
        jax.random.uniform(wkeys[2 * i], (d_model, d_model), jnp.float32, -bound, bound)
        for i in range(4)
    ]
    bs = [
        jax.random.uniform(wkeys[2 * i + 1], (d_model,), jnp.float32, -bound, bound)
        for i in range(4)
    ]

    ref = reference(query, keys_, values, Ws, bs, h, theta)
    params = prepare_params(Ws, bs, h)  # one-time weight permutation + scale fold

    # Exact f32 path.
    out = jax.block_until_ready(
        multi_headed_attention(query, keys_, values, params, h, theta, mxu_dtype=None)
    )
    err = float(jnp.max(jnp.abs(out - ref)))
    assert jnp.allclose(out, ref, atol=2e-3, rtol=2e-3), f"f32 max abs err = {err}"

    # bf16-MXU path (default): bf16 operands/intermediates, f32 accumulation.
    out_bf16 = jax.block_until_ready(
        multi_headed_attention(query, keys_, values, params, h, theta)
    )
    err_bf = float(jnp.max(jnp.abs(out_bf16 - ref)))
    assert jnp.allclose(out_bf16, ref, atol=1e-1, rtol=1e-1), f"bf16 max abs err = {err_bf}"

    print("KERNEL_OK")
</pallas_src>

<mosaic_0001>
module attributes {stable_mosaic.version = 11 : i64} {
  func.func @_linear_kernel(%arg0: i32, %arg1: i32, %arg2: i32, %arg3: memref<16x32xf32, #tpu.memory_space<vmem>>, %arg4: memref<32x32xf32, #tpu.memory_space<vmem>>, %arg5: memref<1x32xf32, #tpu.memory_space<vmem>>, %arg6: memref<16x32xf32, #tpu.memory_space<vmem>>, %arg7: memref<16x32xf32, #tpu.memory_space<vmem>>) attributes {dimension_semantics = [#tpu.dimension_semantics<parallel>, #tpu.dimension_semantics<parallel>, #tpu.dimension_semantics<arbitrary>], iteration_bounds = array<i64: 1, 1, 1>, scalar_prefetch = 0 : i64, scratch_operands = 1 : i64, tpu.core_type = #tpu.core_type<tc>, window_params = [{transform_indices = @transform_0, window_bounds = array<i64: 16, 32>}, {transform_indices = @transform_1, window_bounds = array<i64: 32, 32>}, {transform_indices = @transform_2, window_bounds = array<i64: 1, 32>}, {transform_indices = @transform_3, window_bounds = array<i64: 16, 32>}]} {
    %c0_i32 = arith.constant 0 : i32
    %0 = arith.cmpi eq, %arg2, %c0_i32 : i32
    %1 = arith.extui %0 : i1 to i32
    %c0_i32_0 = arith.constant 0 : i32
    %2 = arith.cmpi ne, %1, %c0_i32_0 : i32
    scf.if %2 {
      %cst_10 = arith.constant 0.000000e+00 : f32
      %12 = vector.broadcast %cst_10 : f32 to vector<16x32xf32>
      %c0_11 = arith.constant 0 : index
      %c0_12 = arith.constant 0 : index
      %13 = vector.load %arg7[%c0_11, %c0_12] : memref<16x32xf32, #tpu.memory_space<vmem>>, vector<16x32xf32>
      tpu.vector_store %arg7[%c0_11, %c0_12], %12 {strides = array<i32>} : memref<16x32xf32, #tpu.memory_space<vmem>>, vector<16x32xf32>,
    } else {
    }
    %c0 = arith.constant 0 : index
    %c0_1 = arith.constant 0 : index
    %3 = vector.load %arg7[%c0, %c0_1] : memref<16x32xf32, #tpu.memory_space<vmem>>, vector<16x32xf32>
    %c0_2 = arith.constant 0 : index
    %c0_3 = arith.constant 0 : index
    %4 = vector.load %arg3[%c0_2, %c0_3] : memref<16x32xf32, #tpu.memory_space<vmem>>, vector<16x32xf32>
    %c0_4 = arith.constant 0 : index
    %c0_5 = arith.constant 0 : index
    %5 = vector.load %arg4[%c0_4, %c0_5] : memref<32x32xf32, #tpu.memory_space<vmem>>, vector<32x32xf32>
    %cst = arith.constant dense<0.000000e+00> : vector<16x32xf32>
    %6 = tpu.matmul %4, %5, %cst {dimension_numbers = #tpu.dot_dimension_numbers<[1], [1], [0], [0], [0, 0, 1, 0], [], []>} : vector<16x32xf32>, vector<32x32xf32>, vector<16x32xf32> -> vector<16x32xf32>
    %7 = arith.addf %3, %6 : vector<16x32xf32>
    %c0_6 = arith.constant 0 : index
    %c0_7 = arith.constant 0 : index
    %8 = vector.load %arg7[%c0_6, %c0_7] : memref<16x32xf32, #tpu.memory_space<vmem>>, vector<16x32xf32>
    tpu.vector_store %arg7[%c0_6, %c0_7], %7 {strides = array<i32>} : memref<16x32xf32, #tpu.memory_space<vmem>>, vector<16x32xf32>,
    %c0_i32_8 = arith.constant 0 : i32
    %9 = arith.cmpi eq, %arg2, %c0_i32_8 : i32
    %10 = arith.extui %9 : i1 to i32
    %c0_i32_9 = arith.constant 0 : i32
    %11 = arith.cmpi ne, %10, %c0_i32_9 : i32
    scf.if %11 {
      %c0_10 = arith.constant 0 : index
      %c0_11 = arith.constant 0 : index
      %12 = vector.load %arg7[%c0_10, %c0_11] : memref<16x32xf32, #tpu.memory_space<vmem>>, vector<16x32xf32>
      %c0_12 = arith.constant 0 : index
      %c0_13 = arith.constant 0 : index
      %13 = vector.load %arg5[%c0_12, %c0_13] : memref<1x32xf32, #tpu.memory_space<vmem>>, vector<1x32xf32>
      %14 = vector.broadcast %13 : vector<1x32xf32> to vector<16x32xf32>
      %15 = arith.addf %12, %14 : vector<16x32xf32>
      %c0_14 = arith.constant 0 : index
      %c0_15 = arith.constant 0 : index
      %16 = vector.load %arg6[%c0_14, %c0_15] : memref<16x32xf32, #tpu.memory_space<vmem>>, vector<16x32xf32>
      tpu.vector_store %arg6[%c0_14, %c0_15], %15 {strides = array<i32>} : memref<16x32xf32, #tpu.memory_space<vmem>>, vector<16x32xf32>,
    } else {
    }
    return
  }
  func.func @transform_0(%arg0: i32, %arg1: i32, %arg2: i32) -> (i32, i32) {
    %c0_i32 = arith.constant 0 : i32
    return %arg0, %arg2 : i32, i32
  }
  func.func @transform_1(%arg0: i32, %arg1: i32, %arg2: i32) -> (i32, i32) {
    %c0_i32 = arith.constant 0 : i32
    return %arg1, %arg2 : i32, i32
  }
  func.func @transform_2(%arg0: i32, %arg1: i32, %arg2: i32) -> (i32, i32) {
    %c0_i32 = arith.constant 0 : i32
    %c0_i32_0 = arith.constant 0 : i32
    return %c0_i32, %arg1 : i32, i32
  }
  func.func @transform_3(%arg0: i32, %arg1: i32, %arg2: i32) -> (i32, i32) {
    %c0_i32 = arith.constant 0 : i32
    return %arg0, %arg1 : i32, i32
  }
}

</mosaic_0001>

<bundles_post_ra>
// kernel: tpu_custom_call.1
= control target key start
LH: loop header
LB: loop body
LE: loop exit
PB: predicated region body
PF: predicated region fallthrough
CT: control target
= control target key end

     0   :  { %8 = vsyncpa [#allocation4], 0  ;;  %s439_s0 = inlined_call_operand.hbm [shape: f32[16,32], index: 0, kind: input, shape index: {}]   ;;  %s440_s1 = inlined_call_operand.hbm [shape: f32[32,32], index: 1, kind: input, shape index: {}]   ;;  %s441_s2 = inlined_call_operand.hbm [shape: f32[1,32], index: 2, kind: input, shape index: {}]   ;;  %s442_s3 = inlined_call_operand.hbm [shape: f32[16,32], index: 3, kind: output, shape index: {}]  }
   0x1   :  { %9 = vsyncpa [#allocation7], 0 }
   0x2   :  { %10 = vsyncpa [#allocation5], 0  ;;  %s338_s12 = smov [#allocation6]   ;;  %s339_s14 = smov [#allocation3]  }
   0x3   :  { %s28_s13 = sshll.u32 %s338_s12, 4  ;;  %s16_s15 = sshll.u32 %s339_s14, 4  ;;  %s29_s13 = int_to_ptr.vmem [resolvable:$true] %s28_s13  ;;  %s365_s15 = int_to_ptr.vmem [resolvable:$true] %s16_s15 }
   0x4   :  { %s244_s18 = scalar_lea.hbm %s440_s1, 512 }
   0x5   :  { %p245_p0 = scmp.ne.s32.totalorder %s440_s1, %s244_s18  ;;  %p248_p1 = scmp.lt.u32.totalorder %s244_s18, %s440_s1 }
   0x7   :  { %p250_p2 = pnand %p248_p1, %p245_p0 }
   0x9   :  { %253 = shalt.err (!%p250_p2)
}
   0xa   :  { %s254_s23 = scalar_lea.vmem %s29_s13, 512  ;;  %p259_p4 = scmp.lt.s32.totalorder %s29_s13, %s29_s13 }
   0xb   :  { %p255_p3 = scmp.ne.s32.totalorder %s29_s13, %s254_s23  ;;  %p260_p5 = scmp.lt.s32.totalorder %s254_s23, %s254_s23 }
   0xd   :  { %p261_p6 = por %p260_p5, %p259_p4 }
   0xf   :  { %p262_p7 = pnand %p261_p6, %p255_p3 }
  0x11   :  { %265 = shalt.err (!%p262_p7)
}
  0x12   :  { %s340_s24 = smov 128   ;;  %s341_s25 = smov 8  }
  0x13   :  { %34 = dma.hbm_to_vmem [thread:$0]  %s440_s1, 512, %s29_s13, [#allocation7], %s340_s24, %s340_s24, %s341_s25  }
  0x14   :  { %s266_s30 = scalar_lea.hbm %s439_s0, 256 }
  0x15   :  { %p267_p8 = scmp.ne.s32.totalorder %s439_s0, %s266_s30  ;;  %p270_p9 = scmp.lt.u32.totalorder %s266_s30, %s439_s0 }
  0x17   :  { %p272_p10 = pnand %p270_p9, %p267_p8 }
  0x19   :  { %275 = shalt.err (!%p272_p10)
}
  0x1a   :  { %s276_s8 = scalar_lea.vmem %s365_s15, 256  ;;  %p281_p12 = scmp.lt.s32.totalorder %s365_s15, %s365_s15 }
  0x1b   :  { %p277_p11 = scmp.ne.s32.totalorder %s365_s15, %s276_s8  ;;  %p282_p13 = scmp.lt.s32.totalorder %s276_s8, %s276_s8 }
  0x1d   :  { %p283_p0 = por %p282_p13, %p281_p12 }
  0x1f   :  { %p284_p1 = pnand %p283_p0, %p277_p11 }
  0x21   :  { %287 = shalt.err (!%p284_p1)
}
  0x22   :  { %22 = dma.hbm_to_vmem [thread:$0]  %s439_s0, 256, %s365_s15, [#allocation4], %s340_s24, %s340_s24, %s341_s25  }
  0x23   :  { %s342_s10 = smov [#allocation8]   ;;  %s288_s14 = scalar_lea.hbm %s441_s2, 16 }
  0x24   :  { %s41_s11 = sshll.u32 %s342_s10, 4  ;;  %p289_p2 = scmp.ne.s32.totalorder %s441_s2, %s288_s14  ;;  %s42_s11 = int_to_ptr.vmem [resolvable:$true] %s41_s11 }
  0x25   :  { %p292_p3 = scmp.lt.u32.totalorder %s288_s14, %s441_s2 }
  0x27   :  { %p294_p4 = pnand %p292_p3, %p289_p2 }
  0x29   :  { %297 = shalt.err (!%p294_p4)
}
  0x2a   :  { %s298_s20 = scalar_lea.vmem %s42_s11, 16  ;;  %s302_s0 = scalar_lea.vmem %s42_s11, 32 }
  0x2b   :  { %p299_p5 = scmp.ne.s32.totalorder %s42_s11, %s298_s20  ;;  %p303_p6 = scmp.lt.s32.totalorder %s42_s11, %s42_s11 }
  0x2c   :  { %p304_p7 = scmp.lt.s32.totalorder %s302_s0, %s298_s20 }
  0x2e   :  { %p305_p8 = por %p304_p7, %p303_p6 }
  0x30   :  { %p306_p9 = pnand %p305_p8, %p299_p5 }
  0x32   :  { %309 = shalt.err (!%p306_p9)
}
  0x33   :  { %44 = dma.hbm_to_vmem [thread:$0]  %s441_s2, 16, %s42_s11, [#allocation7]  }
  0x34   :  { %332 = dma.done.wait [#allocation4], 256  }
  0x35   :  { %333 = vsyncadd [#allocation4], 4294967040 }
  0x36   :  { %334 = dma.done.wait [#allocation7], 528  }
  0x37   :  { %335 = vsyncadd [#allocation7], 4294966768  ;;  %vm58_vm0 = vcmask 261120   ;;  %v343_v0 = vmov 0.0   ;;  %v65_v1 = vld [vmem:[#allocation6] sm:$0xff]  ;;  %v66_v2 = vld [vmem:[#allocation6 + $0x8] sm:$0xff] }
  0x38   :  { %60 = vst.msk [vmem:[#allocation2 + $0x8] sm:$0xff] %vm58_vm0, %v343_v0  ;;  %59 = vst.msk [vmem:[#allocation2] sm:$0xff] %vm58_vm0, %v343_v0  ;;  %v67_v3 = vld [vmem:[#allocation6 + $0x10] sm:$0xff]  ;;  %v225_v4 = vpack.c.bf16 %v66_v2, %v65_v1  ;;  %v68_v5 = vld [vmem:[#allocation6 + $0x18] sm:$0xff]  ;;  %s344_s2 = smov [#allocation9]  }
  0x39   :  { %vm226_vm1 = vmpackc.low %vm58_vm0, %vm58_vm0  ;;  %v63_v6 = vld [vmem:[#allocation3] sm:$0xff]  ;;  %v231_v7 = vpack.c.bf16 %v68_v5, %v67_v3  ;;  %v64_v8 = vld [vmem:[#allocation3 + $0x8] sm:$0xff]  ;;  %s188_s22 = sshll.u32 %s344_s2, 4  ;;  %s189_s22 = int_to_ptr.vmem [resolvable:$true] %s188_s22 }
  0x3a   :  { %222 = vmatprep.mubr.msk.f32.mxu0 %vm58_vm0, %v63_v6  ;;  %227 = vmatprep.subr.msk.bf16.mxu0 %vm226_vm1, %v225_v4  ;;  %v207_v15 = vld [vmem:[#allocation8] ss:$0 sm:$0xff]  ;;  %s310_s23 = scalar_lea.vmem %s189_s22, 256  ;;  %p315_p11 = scmp.lt.s32.totalorder %s189_s22, %s189_s22 }
  0x3b   :  { %230 = vmatpush3.bf16.xpose.msk.msra.mxu0 %vm226_vm1, %v225_v4  ;;  %p311_p10 = scmp.ne.s32.totalorder %s189_s22, %s310_s23  ;;  %p316_p12 = scmp.lt.s32.totalorder %s310_s23, %s310_s23 }
  0x3c   :  { %233 = vmatprep.subr.msk.bf16.mxu0 %vm226_vm1, %v231_v7 }
  0x3d   :  { %p317_p13 = por %p316_p12, %p315_p11 }
  0x3f   :  { %v62_v9 = vld [vmem:[#allocation2 + $0x8] sm:$0xff]  ;;  %v61_v10 = vld [vmem:[#allocation2] sm:$0xff]  ;;  %p318_p0 = pnand %p317_p13, %p311_p10 }
  0x43   :  { %236 = vmatpush3.bf16.xpose.msk.msra.mxu0 %vm226_vm1, %v231_v7 }
  0x4a   :  { %223 = vmatmul.mubr.msk.f32.vlgmr.msra.gmra.mrb[0].mxu0 %vm58_vm0, %v64_v8 }
 0x11d   :  { %v224_v11 = vpop.f32.mrb[0].mxu0 }
 0x11e   :  { %v164_v12 = vadd.f32 %v224_v11, %v62_v9  ;;  %v154_v13 = vpop.f32.mrb[1].mxu0 }
 0x11f   :  { %v163_v14 = vadd.f32 %v154_v13, %v61_v10 }
 0x120   :  { %166 = vst.msk [vmem:[#allocation2 + $0x8] sm:$0xff] %vm58_vm0, %v164_v12 }
 0x121   :  { %165 = vst.msk [vmem:[#allocation2] sm:$0xff] %vm58_vm0, %v163_v14 }
 0x127   :  { %v171_v16 = vld [vmem:[#allocation2 + $0x8] sm:$0xff] }
 0x128   :  { %v170_v17 = vld [vmem:[#allocation2] sm:$0xff]  ;;  %v180_v18 = vadd.f32 %v207_v15, %v171_v16 }
 0x129   :  { %v179_v19 = vadd.f32 %v207_v15, %v170_v17 }
 0x12a   :  { %182 = vst.msk [vmem:[#allocation9 + $0x8] sm:$0xff] %vm58_vm0, %v180_v18 }
 0x12b   :  { %181 = vst.msk [vmem:[#allocation9] sm:$0xff] %vm58_vm0, %v179_v19 }
 0x12c   :  { %321 = shalt.err (!%p318_p0)
}
 0x12d   :  { %s322_s28 = scalar_lea.hbm %s442_s3, 256 }
 0x12e   :  { %p323_p1 = scmp.ne.s32.totalorder %s442_s3, %s322_s28  ;;  %p326_p2 = scmp.lt.u32.totalorder %s322_s28, %s442_s3 }
 0x130   :  { %p328_p3 = pnand %p326_p2, %p323_p1 }
 0x132   :  { %331 = shalt.err (!%p328_p3)
}
 0x133   :  { %194 = dma.vmem_to_hbm [thread:$0]  %s189_s22, 256, %s442_s3, [#allocation5], %s340_s24, %s340_s24, %s341_s25  }
 0x134   :  { %336 = dma.done.wait [#allocation5], 256  }
 0x135   :  { %337 = vsyncadd [#allocation5], 4294967040 }
 0x136   :  { %198 = vsyncpa [#allocation4], 1 }
 0x137   :  { %199 = vsyncpa [#allocation7], 1 }
 0x138   :  { %200 = vsyncpa [#allocation5], 1 }

</bundles_post_ra>
